<compile_context>
chip_gen: v6e
topology: v6e:2x2x1
jax: 0.10.0
libtpu: 0.0.40
codegen_flags: <defaults>
</compile_context>

<pallas_src>
import jax
import jax.numpy as jnp
from jax.experimental import pallas as pl
from jax.experimental.pallas import tpu as pltpu

# ----- problem sizes (small, consistent with the module's forward) -----
B = 2             # batch_size
N = 8             # num_nodes
D = 32            # input_dim
N_QUBITS = 4
OUT = 2 ** N_QUBITS   # output_dim = 16
H1 = D * 2            # 64
H2 = D * 4            # 128

LN_EPS = 1e-5         # PyTorch nn.LayerNorm default
NORM_EPS = 1e-8       # module uses /(norm + 1e-8)  (add, not clamp)


def _round_up(a, m):
    return ((a + m - 1) // m) * m


def _layernorm(h, gamma, beta):
    mu = jnp.mean(h, axis=-1, keepdims=True)
    var = jnp.mean((h - mu) * (h - mu), axis=-1, keepdims=True)
    return (h - mu) * jax.lax.rsqrt(var + LN_EPS) * gamma + beta


# ----------------------------- kernel -----------------------------

def qfr_kernel(x_ref,
               w1_ref, b1_ref, g1_ref, be1_ref,
               w2_ref, b2_ref, g2_ref, be2_ref,
               w3_ref, b3_ref,
               o_ref):
    # Node pooling: the 1/N of the mean is folded into w1 in the wrapper, so a
    # plain sum (XLU sublane reduce) suffices. Accumulate in f32, feed bf16 to
    # the MXU, keep all VPU/EUP math in f32 (v5e has no bf16 VALU/EUP).
    x = x_ref[...].astype(jnp.float32)                   # [M, N, D]
    x_pool = jnp.sum(x, axis=1).astype(jnp.bfloat16)     # [M, D]

    # Linear(D -> 2D) + ReLU + LayerNorm(2D)
    h1 = jnp.dot(x_pool, w1_ref[...],
                 preferred_element_type=jnp.float32) + b1_ref[...]
    h1 = _layernorm(jnp.maximum(h1, 0.0), g1_ref[...], be1_ref[...])

    # Linear(2D -> 4D) + ReLU + LayerNorm(4D)
    h2 = jnp.dot(h1.astype(jnp.bfloat16), w2_ref[...],
                 preferred_element_type=jnp.float32) + b2_ref[...]
    h2 = _layernorm(jnp.maximum(h2, 0.0), g2_ref[...], be2_ref[...])

    # Linear(4D -> OUT_pad) + Tanh. w3/b3 are zero-padded to 128 lanes; tanh(0)=0
    # so padded columns are exact zeros and do not change the L2 norm, while the
    # output store becomes lane-dense (unmasked vst).
    h3 = jnp.tanh(jnp.dot(h2.astype(jnp.bfloat16), w3_ref[...],
                          preferred_element_type=jnp.float32) + b3_ref[...])

    # L2 normalize with the module's eps semantics: /(norm + 1e-8).
    norm = jnp.sqrt(jnp.sum(h3 * h3, axis=-1, keepdims=True))
    inv = pl.reciprocal(norm + NORM_EPS)   # exact EUP reciprocal-multiply
    o_ref[...] = h3 * inv


# ----------------------------- wrapper -----------------------------

def _pack_params(params, num_nodes):
    """Fold mean scale into w1, cast matmul weights to bf16, lane-pad w3/b3."""
    w1, b1, g1, be1, w2, b2, g2, be2, w3, b3 = params
    out_dim = w3.shape[1]
    out_pad = _round_up(out_dim, 128)
    w1p = (w1 / float(num_nodes)).astype(jnp.bfloat16)        # mean -> sum pool
    w2p = w2.astype(jnp.bfloat16)
    w3p = jnp.pad(w3, ((0, 0), (0, out_pad - out_dim))).astype(jnp.bfloat16)
    b3p = jnp.pad(b3, ((0, 0), (0, out_pad - out_dim)))
    # Biases / LayerNorm params stay f32 (used on the VPU only).
    return (w1p, b1, g1, be1, w2p, b2, g2, be2, w3p, b3p), out_pad


def quantum_feature_reduction(x, params, *, max_rows_per_tile=1024):
    """x: [B, N, D] float32, params: tuple of 10 f32 arrays. Returns [B, OUT]."""
    b_in, n_nodes, d_in = x.shape
    packed, out_pad = _pack_params(params, n_nodes)
    h1 = packed[0].shape[1]
    h2 = packed[4].shape[1]
    out_dim = params[8].shape[1]

    # Pad the batch to a sublane multiple (8) so vregs / MXU rows are filled;
    # padded rows are discarded after the call.
    max_rows_per_tile = max(8, _round_up(max_rows_per_tile, 8))
    b_pad = _round_up(b_in, 8)
    if b_pad <= max_rows_per_tile:
        tile_m, grid = b_pad, None               # single grid-less invocation
    else:
        tile_m = max_rows_per_tile
        b_pad = _round_up(b_pad, tile_m)
        grid = (b_pad // tile_m,)

    if b_pad != b_in:
        x = jnp.pad(x, ((0, b_pad - b_in), (0, 0), (0, 0)))
    x_bf16 = x.astype(jnp.bfloat16)              # halve activation DMA

    cost = pl.CostEstimate(
        flops=2 * b_pad * (d_in * h1 + h1 * h2 + h2 * out_pad)
              + b_pad * n_nodes * d_in,
        transcendentals=b_pad * (out_pad + 4),
        bytes_accessed=int(x_bf16.size) * 2 + b_pad * out_pad * 4
                       + sum(int(p.size) * p.dtype.itemsize for p in packed),
    )

    out_shape = jax.ShapeDtypeStruct((b_pad, out_pad), jnp.float32)
    n_in = 1 + len(packed)

    if grid is None:
        # Launch/overhead bound at small B: keep a single grid-less call.
        call = pl.pallas_call(
            qfr_kernel,
            out_shape=out_shape,
            in_specs=[pl.BlockSpec(memory_space=pltpu.MemorySpace.VMEM)] * n_in,
            out_specs=pl.BlockSpec(memory_space=pltpu.MemorySpace.VMEM),
            cost_estimate=cost,
        )
    else:
        # Large batches: tile rows along a "parallel" grid axis so the two
        # TensorCores on v7x each take part of the batch. Weights map to the
        # same block every step, so they are not re-fetched.
        call = pl.pallas_call(
            qfr_kernel,
            out_shape=out_shape,
            grid=grid,
            in_specs=[pl.BlockSpec((tile_m, n_nodes, d_in), lambda i: (i, 0, 0))]
                     + [pl.BlockSpec(p.shape, lambda i: (0, 0)) for p in packed],
            out_specs=pl.BlockSpec((tile_m, out_pad), lambda i: (i, 0)),
            compiler_params=pltpu.CompilerParams(
                dimension_semantics=("parallel",)),
            cost_estimate=cost,
        )

    out_full = call(x_bf16, *packed)
    return out_full[:b_in, :out_dim]


# ----------------------------- params & references -----------------------------

def init_params(key):
    """Deterministic synthetic parameters (PyTorch-Linear-like uniform init).

    Linear weights stored as [in_features, out_features]; biases and LayerNorm
    params as [1, features] for TPU-friendly 2D broadcasting.
    """
    ks = jax.random.split(key, 6)

    def lin(kw, kb, fan_in, fan_out):
        bound = 1.0 / jnp.sqrt(fan_in)
        w = jax.random.uniform(kw, (fan_in, fan_out), jnp.float32, -bound, bound)
        b = jax.random.uniform(kb, (1, fan_out), jnp.float32, -bound, bound)
        return w, b

    w1, b1 = lin(ks[0], ks[1], D, H1)
    w2, b2 = lin(ks[2], ks[3], H1, H2)
    w3, b3 = lin(ks[4], ks[5], H2, OUT)

    g1 = jnp.ones((1, H1), jnp.float32)
    be1 = jnp.zeros((1, H1), jnp.float32)
    g2 = jnp.ones((1, H2), jnp.float32)
    be2 = jnp.zeros((1, H2), jnp.float32)

    return (w1, b1, g1, be1, w2, b2, g2, be2, w3, b3)


def reference_forward_mixed(x, params):
    """Pure-JAX reference mirroring the kernel's bf16-matmul / f32-elementwise path."""
    w1, b1, g1, be1, w2, b2, g2, be2, w3, b3 = params
    n = x.shape[1]
    xp = jnp.sum(x.astype(jnp.bfloat16).astype(jnp.float32), axis=1)
    h1 = jnp.dot(xp.astype(jnp.bfloat16), (w1 / float(n)).astype(jnp.bfloat16),
                 preferred_element_type=jnp.float32) + b1
    h1 = _layernorm(jnp.maximum(h1, 0.0), g1, be1)
    h2 = jnp.dot(h1.astype(jnp.bfloat16), w2.astype(jnp.bfloat16),
                 preferred_element_type=jnp.float32) + b2
    h2 = _layernorm(jnp.maximum(h2, 0.0), g2, be2)
    h3 = jnp.tanh(jnp.dot(h2.astype(jnp.bfloat16), w3.astype(jnp.bfloat16),
                          preferred_element_type=jnp.float32) + b3)
    norm = jnp.sqrt(jnp.sum(h3 * h3, axis=-1, keepdims=True))
    return h3 / (norm + NORM_EPS)


def reference_forward_f32(x, params):
    """Full-f32 reference matching the original PyTorch module semantics."""
    w1, b1, g1, be1, w2, b2, g2, be2, w3, b3 = params
    xp = jnp.mean(x, axis=1)
    h1 = _layernorm(jnp.maximum(xp @ w1 + b1, 0.0), g1, be1)
    h2 = _layernorm(jnp.maximum(h1 @ w2 + b2, 0.0), g2, be2)
    h3 = jnp.tanh(h2 @ w3 + b3)
    norm = jnp.sqrt(jnp.sum(h3 * h3, axis=-1, keepdims=True))
    return h3 / (norm + NORM_EPS)


# ----------------------------- main -----------------------------

if __name__ == "__main__":
    key = jax.random.PRNGKey(0)
    kx, kp, kx2 = jax.random.split(key, 3)
    x = jax.random.normal(kx, (B, N, D), jnp.float32)
    params = init_params(kp)

    # Small-batch (grid-less) path.
    out = jax.block_until_ready(quantum_feature_reduction(x, params))
    assert out.shape == (B, OUT), out.shape

    ref_mixed = reference_forward_mixed(x, params)
    assert jnp.allclose(out, ref_mixed, atol=5e-4, rtol=5e-4), \
        f"mixed-precision max err {jnp.max(jnp.abs(out - ref_mixed))}"

    ref_f32 = reference_forward_f32(x, params)
    assert jnp.allclose(out, ref_f32, atol=1e-1, rtol=1e-1), \
        f"f32-semantics max err {jnp.max(jnp.abs(out - ref_f32))}"

    # Larger batch exercises the batch-tiled "parallel" grid path.
    xb = jax.random.normal(kx2, (300, N, D), jnp.float32)
    outb = jax.block_until_ready(
        quantum_feature_reduction(xb, params, max_rows_per_tile=128))
    refb = reference_forward_mixed(xb, params)
    assert outb.shape == (300, OUT), outb.shape
    assert jnp.allclose(outb, refb, atol=5e-4, rtol=5e-4), \
        f"grid-path max err {jnp.max(jnp.abs(outb - refb))}"

    print("KERNEL_OK")
</pallas_src>

<mosaic_0001>
module attributes {stable_mosaic.version = 11 : i64} {
  func.func @qfr_kernel(%arg0: memref<8x8x32xbf16, #tpu.memory_space<vmem>>, %arg1: memref<32x64xbf16, #tpu.memory_space<vmem>>, %arg2: memref<1x64xf32, #tpu.memory_space<vmem>>, %arg3: memref<1x64xf32, #tpu.memory_space<vmem>>, %arg4: memref<1x64xf32, #tpu.memory_space<vmem>>, %arg5: memref<64x128xbf16, #tpu.memory_space<vmem>>, %arg6: memref<1x128xf32, #tpu.memory_space<vmem>>, %arg7: memref<1x128xf32, #tpu.memory_space<vmem>>, %arg8: memref<1x128xf32, #tpu.memory_space<vmem>>, %arg9: memref<128x128xbf16, #tpu.memory_space<vmem>>, %arg10: memref<1x128xf32, #tpu.memory_space<vmem>>, %arg11: memref<8x128xf32, #tpu.memory_space<vmem>>) attributes {dimension_semantics = [], scalar_prefetch = 0 : i64, scratch_operands = 0 : i64, tpu.core_type = #tpu.core_type<tc>} {
    %c0 = arith.constant 0 : index
    %c0_0 = arith.constant 0 : index
    %c0_1 = arith.constant 0 : index
    %0 = vector.load %arg0[%c0, %c0_0, %c0_1] : memref<8x8x32xbf16, #tpu.memory_space<vmem>>, vector<8x8x32xbf16>
    %1 = arith.extf %0 : vector<8x8x32xbf16> to vector<8x8x32xf32>
    %cst = arith.constant dense<0.000000e+00> : vector<8x32xf32>
    %2 = vector.multi_reduction <add>, %1, %cst [1] : vector<8x8x32xf32> to vector<8x32xf32>
    %3 = arith.truncf %2 : vector<8x32xf32> to vector<8x32xbf16>
    %c0_2 = arith.constant 0 : index
    %c0_3 = arith.constant 0 : index
    %4 = vector.load %arg1[%c0_2, %c0_3] : memref<32x64xbf16, #tpu.memory_space<vmem>>, vector<32x64xbf16>
    %cst_4 = arith.constant dense<0.000000e+00> : vector<8x64xf32>
    %5 = tpu.matmul %3, %4, %cst_4 {dimension_numbers = #tpu.dot_dimension_numbers<[1], [0], [0], [1], [0, 0, 1, 1], [], []>} : vector<8x32xbf16>, vector<32x64xbf16>, vector<8x64xf32> -> vector<8x64xf32>
    %c0_5 = arith.constant 0 : index
    %c0_6 = arith.constant 0 : index
    %6 = vector.load %arg2[%c0_5, %c0_6] : memref<1x64xf32, #tpu.memory_space<vmem>>, vector<1x64xf32>
    %7 = vector.broadcast %6 : vector<1x64xf32> to vector<8x64xf32>
    %8 = arith.addf %5, %7 : vector<8x64xf32>
    %cst_7 = arith.constant 0.000000e+00 : f32
    %9 = vector.broadcast %cst_7 : f32 to vector<8x64xf32>
    %10 = arith.maximumf %8, %9 : vector<8x64xf32>
    %c0_8 = arith.constant 0 : index
    %c0_9 = arith.constant 0 : index
    %11 = vector.load %arg3[%c0_8, %c0_9] : memref<1x64xf32, #tpu.memory_space<vmem>>, vector<1x64xf32>
    %c0_10 = arith.constant 0 : index
    %c0_11 = arith.constant 0 : index
    %12 = vector.load %arg4[%c0_10, %c0_11] : memref<1x64xf32, #tpu.memory_space<vmem>>, vector<1x64xf32>
    %cst_12 = arith.constant dense<0.000000e+00> : vector<8xf32>
    %13 = vector.multi_reduction <add>, %10, %cst_12 [1] : vector<8x64xf32> to vector<8xf32>
    %14 = vector.shape_cast %13 : vector<8xf32> to vector<8x1xf32>
    %cst_13 = arith.constant 6.400000e+01 : f32
    %15 = vector.broadcast %cst_13 : f32 to vector<8x1xf32>
    %16 = arith.divf %14, %15 : vector<8x1xf32>
    %17 = vector.broadcast %16 : vector<8x1xf32> to vector<8x64xf32>
    %18 = arith.subf %10, %17 : vector<8x64xf32>
    %19 = vector.broadcast %16 : vector<8x1xf32> to vector<8x64xf32>
    %20 = arith.subf %10, %19 : vector<8x64xf32>
    %21 = arith.mulf %18, %20 : vector<8x64xf32>
    %cst_14 = arith.constant dense<0.000000e+00> : vector<8xf32>
    %22 = vector.multi_reduction <add>, %21, %cst_14 [1] : vector<8x64xf32> to vector<8xf32>
    %23 = vector.shape_cast %22 : vector<8xf32> to vector<8x1xf32>
    %cst_15 = arith.constant 6.400000e+01 : f32
    %24 = vector.broadcast %cst_15 : f32 to vector<8x1xf32>
    %25 = arith.divf %23, %24 : vector<8x1xf32>
    %26 = vector.broadcast %16 : vector<8x1xf32> to vector<8x64xf32>
    %27 = arith.subf %10, %26 : vector<8x64xf32>
    %cst_16 = arith.constant 9.99999974E-6 : f32
    %28 = vector.broadcast %cst_16 : f32 to vector<8x1xf32>
    %29 = arith.addf %25, %28 : vector<8x1xf32>
    %30 = math.rsqrt %29 : vector<8x1xf32>
    %31 = vector.broadcast %30 : vector<8x1xf32> to vector<8x64xf32>
    %32 = arith.mulf %27, %31 : vector<8x64xf32>
    %33 = vector.broadcast %11 : vector<1x64xf32> to vector<8x64xf32>
    %34 = arith.mulf %32, %33 : vector<8x64xf32>
    %35 = vector.broadcast %12 : vector<1x64xf32> to vector<8x64xf32>
    %36 = arith.addf %34, %35 : vector<8x64xf32>
    %37 = arith.truncf %36 : vector<8x64xf32> to vector<8x64xbf16>
    %c0_17 = arith.constant 0 : index
    %c0_18 = arith.constant 0 : index
    %38 = vector.load %arg5[%c0_17, %c0_18] : memref<64x128xbf16, #tpu.memory_space<vmem>>, vector<64x128xbf16>
    %cst_19 = arith.constant dense<0.000000e+00> : vector<8x128xf32>
    %39 = tpu.matmul %37, %38, %cst_19 {dimension_numbers = #tpu.dot_dimension_numbers<[1], [0], [0], [1], [0, 0, 1, 1], [], []>} : vector<8x64xbf16>, vector<64x128xbf16>, vector<8x128xf32> -> vector<8x128xf32>
    %c0_20 = arith.constant 0 : index
    %c0_21 = arith.constant 0 : index
    %40 = vector.load %arg6[%c0_20, %c0_21] : memref<1x128xf32, #tpu.memory_space<vmem>>, vector<1x128xf32>
    %41 = vector.broadcast %40 : vector<1x128xf32> to vector<8x128xf32>
    %42 = arith.addf %39, %41 : vector<8x128xf32>
    %cst_22 = arith.constant 0.000000e+00 : f32
    %43 = vector.broadcast %cst_22 : f32 to vector<8x128xf32>
    %44 = arith.maximumf %42, %43 : vector<8x128xf32>
    %c0_23 = arith.constant 0 : index
    %c0_24 = arith.constant 0 : index
    %45 = vector.load %arg7[%c0_23, %c0_24] : memref<1x128xf32, #tpu.memory_space<vmem>>, vector<1x128xf32>
    %c0_25 = arith.constant 0 : index
    %c0_26 = arith.constant 0 : index
    %46 = vector.load %arg8[%c0_25, %c0_26] : memref<1x128xf32, #tpu.memory_space<vmem>>, vector<1x128xf32>
    %cst_27 = arith.constant dense<0.000000e+00> : vector<8xf32>
    %47 = vector.multi_reduction <add>, %44, %cst_27 [1] : vector<8x128xf32> to vector<8xf32>
    %48 = vector.shape_cast %47 : vector<8xf32> to vector<8x1xf32>
    %cst_28 = arith.constant 1.280000e+02 : f32
    %49 = vector.broadcast %cst_28 : f32 to vector<8x1xf32>
    %50 = arith.divf %48, %49 : vector<8x1xf32>
    %51 = vector.broadcast %50 : vector<8x1xf32> to vector<8x128xf32>
    %52 = arith.subf %44, %51 : vector<8x128xf32>
    %53 = vector.broadcast %50 : vector<8x1xf32> to vector<8x128xf32>
    %54 = arith.subf %44, %53 : vector<8x128xf32>
    %55 = arith.mulf %52, %54 : vector<8x128xf32>
    %cst_29 = arith.constant dense<0.000000e+00> : vector<8xf32>
    %56 = vector.multi_reduction <add>, %55, %cst_29 [1] : vector<8x128xf32> to vector<8xf32>
    %57 = vector.shape_cast %56 : vector<8xf32> to vector<8x1xf32>
    %cst_30 = arith.constant 1.280000e+02 : f32
    %58 = vector.broadcast %cst_30 : f32 to vector<8x1xf32>
    %59 = arith.divf %57, %58 : vector<8x1xf32>
    %60 = vector.broadcast %50 : vector<8x1xf32> to vector<8x128xf32>
    %61 = arith.subf %44, %60 : vector<8x128xf32>
    %cst_31 = arith.constant 9.99999974E-6 : f32
    %62 = vector.broadcast %cst_31 : f32 to vector<8x1xf32>
    %63 = arith.addf %59, %62 : vector<8x1xf32>
    %64 = math.rsqrt %63 : vector<8x1xf32>
    %65 = vector.broadcast %64 : vector<8x1xf32> to vector<8x128xf32>
    %66 = arith.mulf %61, %65 : vector<8x128xf32>
    %67 = vector.broadcast %45 : vector<1x128xf32> to vector<8x128xf32>
    %68 = arith.mulf %66, %67 : vector<8x128xf32>
    %69 = vector.broadcast %46 : vector<1x128xf32> to vector<8x128xf32>
    %70 = arith.addf %68, %69 : vector<8x128xf32>
    %71 = arith.truncf %70 : vector<8x128xf32> to vector<8x128xbf16>
    %c0_32 = arith.constant 0 : index
    %c0_33 = arith.constant 0 : index
    %72 = vector.load %arg9[%c0_32, %c0_33] : memref<128x128xbf16, #tpu.memory_space<vmem>>, vector<128x128xbf16>
    %cst_34 = arith.constant dense<0.000000e+00> : vector<8x128xf32>
    %73 = tpu.matmul %71, %72, %cst_34 {dimension_numbers = #tpu.dot_dimension_numbers<[1], [0], [0], [1], [0, 0, 1, 1], [], []>} : vector<8x128xbf16>, vector<128x128xbf16>, vector<8x128xf32> -> vector<8x128xf32>
    %c0_35 = arith.constant 0 : index
    %c0_36 = arith.constant 0 : index
    %74 = vector.load %arg10[%c0_35, %c0_36] : memref<1x128xf32, #tpu.memory_space<vmem>>, vector<1x128xf32>
    %75 = vector.broadcast %74 : vector<1x128xf32> to vector<8x128xf32>
    %76 = arith.addf %73, %75 : vector<8x128xf32>
    %77 = math.tanh %76 : vector<8x128xf32>
    %78 = arith.mulf %77, %77 : vector<8x128xf32>
    %cst_37 = arith.constant dense<0.000000e+00> : vector<8xf32>
    %79 = vector.multi_reduction <add>, %78, %cst_37 [1] : vector<8x128xf32> to vector<8xf32>
    %80 = vector.shape_cast %79 : vector<8xf32> to vector<8x1xf32>
    %81 = math.sqrt %80 : vector<8x1xf32>
    %cst_38 = arith.constant 9.99999993E-9 : f32
    %82 = vector.broadcast %cst_38 : f32 to vector<8x1xf32>
    %83 = arith.addf %81, %82 : vector<8x1xf32>
    %84 = tpu.reciprocal %83 : vector<8x1xf32> -> vector<8x1xf32>
    %85 = vector.broadcast %84 : vector<8x1xf32> to vector<8x128xf32>
    %86 = arith.mulf %77, %85 : vector<8x128xf32>
    %c0_39 = arith.constant 0 : index
    %c0_40 = arith.constant 0 : index
    %87 = vector.load %arg11[%c0_39, %c0_40] : memref<8x128xf32, #tpu.memory_space<vmem>>, vector<8x128xf32>
    tpu.vector_store %arg11[%c0_39, %c0_40], %86 {strides = array<i32>} : memref<8x128xf32, #tpu.memory_space<vmem>>, vector<8x128xf32>,
    return
  }
}

</mosaic_0001>

<bundles_post_ra>
// kernel: tpu_custom_call.1
= control target key start
LH: loop header
LB: loop body
LE: loop exit
PB: predicated region body
PF: predicated region fallthrough
CT: control target
= control target key end

     0   :  { %16 = vsyncpa [#allocation3], 0  ;;  %s952_s0 = inlined_call_operand.hbm [shape: bf16[8,8,32], index: 0, kind: input, shape index: {}]   ;;  %s953_s1 = inlined_call_operand.hbm [shape: bf16[32,64], index: 1, kind: input, shape index: {}]   ;;  %s954_s2 = inlined_call_operand.vmem [shape: f32[1,64], index: 2, kind: input, shape index: {}]   ;;  %s955_s3 = inlined_call_operand.vmem [shape: f32[1,64], index: 3, kind: input, shape index: {}]   ;;  %s956_s4 = inlined_call_operand.vmem [shape: f32[1,64], index: 4, kind: input, shape index: {}]   ;;  %s957_s5 = inlined_call_operand.hbm [shape: bf16[64,128], index: 5, kind: input, shape index: {}]   ;;  %s958_s6 = inlined_call_operand.vmem [shape: f32[1,128], index: 6, kind: input, shape index: {}]   ;;  %s959_s7 = inlined_call_operand.vmem [shape: f32[1,128], index: 7, kind: input, shape index: {}]   ;;  %s960_s8 = inlined_call_operand.vmem [shape: f32[1,128], index: 8, kind: input, shape index: {}]   ;;  %s961_s9 = inlined_call_operand.hbm [shape: bf16[128,128], index: 9, kind: input, shape index: {}]   ;;  %s962_s10 = inlined_call_operand.vmem [shape: f32[1,128], index: 10, kind: input, shape index: {}]   ;;  %s963_s11 = inlined_call_operand.hbm [shape: f32[8,128], index: 11, kind: output, shape index: {}]  }
   0x1   :  { %17 = vsyncpa [#allocation6], 0 }
   0x2   :  { %18 = vsyncpa [#allocation9], 0 }
   0x3   :  { %19 = vsyncpa [#allocation4], 0  ;;  %s801_s17 = smov [#allocation5]   ;;  %s802_s19 = smov [#allocation2]  }
   0x4   :  { %s37_s18 = sshll.u32 %s801_s17, 4  ;;  %s25_s20 = sshll.u32 %s802_s19, 4  ;;  %s38_s18 = int_to_ptr.vmem [resolvable:$true] %s37_s18  ;;  %s26_s20 = int_to_ptr.vmem [resolvable:$true] %s25_s20 }
   0x5   :  { %s701_s21 = scalar_lea.vmem %s38_s18, 256  ;;  %p706_p1 = scmp.lt.s32.totalorder %s38_s18, %s38_s18 }
   0x6   :  { %p702_p0 = scmp.ne.s32.totalorder %s38_s18, %s701_s21  ;;  %p707_p2 = scmp.lt.s32.totalorder %s701_s21, %s701_s21 }
   0x8   :  { %p708_p3 = por %p707_p2, %p706_p1 }
   0xa   :  { %p709_p4 = pnand %p708_p3, %p702_p0 }
   0xc   :  { %712 = shalt.err (!%p709_p4)
}
   0xd   :  { %s803_s22 = smov 64   ;;  %s804_s23 = smov 4  }
   0xe   :  { %43 = dma.hbm_to_vmem [thread:$0]  %s953_s1, 256, %s38_s18, [#allocation6], %s803_s22, %s803_s22, %s804_s23  }
   0xf   :  { %s721_s26 = scalar_lea.vmem %s26_s20, 512  ;;  %p726_p6 = scmp.lt.s32.totalorder %s26_s20, %s26_s20 }
  0x10   :  { %p722_p5 = scmp.ne.s32.totalorder %s26_s20, %s721_s26  ;;  %p727_p7 = scmp.lt.s32.totalorder %s721_s26, %s721_s26 }
  0x12   :  { %p728_p8 = por %p727_p7, %p726_p6 }
  0x14   :  { %p729_p9 = pnand %p728_p8, %p722_p5 }
  0x16   :  { %732 = shalt.err (!%p729_p9)
}
  0x17   :  { %31 = dma.hbm_to_vmem [thread:$0]  %s952_s0, 512, %s26_s20, [#allocation3], %s803_s22, %s803_s22, %s804_s23  }
  0x18   :  { %s805_s29 = smov [#allocation7]   ;;  %s806_s12 = smov [#allocation8]  }
  0x19   :  { %s55_s30 = sshll.u32 %s805_s29, 4  ;;  %s73_s13 = sshll.u32 %s806_s12, 4  ;;  %s56_s30 = int_to_ptr.vmem [resolvable:$true] %s55_s30  ;;  %s74_s13 = int_to_ptr.vmem [resolvable:$true] %s73_s13 }
  0x1a   :  { %s741_s1 = scalar_lea.vmem %s56_s30, 512  ;;  %p746_p11 = scmp.lt.s32.totalorder %s56_s30, %s56_s30 }
  0x1b   :  { %p742_p10 = scmp.ne.s32.totalorder %s56_s30, %s741_s1  ;;  %p747_p12 = scmp.lt.s32.totalorder %s741_s1, %s741_s1 }
  0x1d   :  { %p748_p13 = por %p747_p12, %p746_p11 }
  0x1f   :  { %p749_p0 = pnand %p748_p13, %p742_p10 }
  0x21   :  { %752 = shalt.err (!%p749_p0)
}
  0x22   :  { %61 = dma.hbm_to_vmem [thread:$0]  %s957_s5, 512, %s56_s30, [#allocation6], %s803_s22, %s803_s22, %s804_s23  }
  0x23   :  { %s761_s0 = scalar_lea.vmem %s74_s13, 1024  ;;  %p766_p2 = scmp.lt.s32.totalorder %s74_s13, %s74_s13 }
  0x24   :  { %p762_p1 = scmp.ne.s32.totalorder %s74_s13, %s761_s0  ;;  %p767_p3 = scmp.lt.s32.totalorder %s761_s0, %s761_s0 }
  0x26   :  { %p768_p4 = por %p767_p3, %p766_p2 }
  0x28   :  { %p769_p5 = pnand %p768_p4, %p762_p1 }
  0x2a   :  { %772 = shalt.err (!%p769_p5)
}
  0x2b   :  { %79 = dma.hbm_to_vmem [thread:$0]  %s961_s9, 1024, %s74_s13, [#allocation9], %s803_s22, %s803_s22, %s804_s23  }
  0x2c   :  { %793 = dma.done.wait [#allocation3], 512  }
  0x2d   :  { %794 = vsyncadd [#allocation3], 4294966784 }
  0x2e   :  { %795 = dma.done.wait [#allocation6], 768  }
  0x2f   :  { %796 = vsyncadd [#allocation6], 4294966528 }
  0x30   :  { %797 = dma.done.wait [#allocation9], 1024  }
  0x31   :  { %798 = vsyncadd [#allocation9], 4294966272  ;;  %v807_v0 = vmov 0.0   ;;  %vm808_vm0 = vmmov 0   ;;  %v669_v1 = vld [vmem:[#allocation5 + $0x8] sm:$0xff]   ;;  %v670_v2 = vld [vmem:[#allocation5] sm:$0xff]  }
  0x32   :  { %620 = vmatprep.subr.bf16.mxu1 %v807_v0  ;;  %624 = vmatprep.mubr.msk.bf16.mxu1 %vm808_vm0, %v807_v0  ;;  %v585_v3 = vld [vmem:[#allocation2] sm:$0xff]   ;;  %v600_v4 = vld [vmem:[#allocation2 + $0x8] sm:$0xff]   ;;  %v601_v5 = vld [vmem:[#allocation2 + $0x10] sm:$0xff]   ;;  %vm111_vm1 = vcmask 261120   ;;  %vm203_vm2 = vcmask 1041409   ;;  %vm205_vm3 = vcmask 1042434  }
  0x33   :  { %640 = vmatprep.subr.bf16.mxu0 %v807_v0  ;;  %656 = vmatprep.mubr.msk.bf16.mxu0 %vm808_vm0, %v807_v0  ;;  %v586_v6 = vunpack.c.l.bf16 %v585_v3  ;;  %v587_v7 = vunpack.c.h.bf16 %v585_v3  ;;  %v590_v8 = vunpack.c.l.bf16 %v600_v4  ;;  %v591_v9 = vunpack.c.h.bf16 %v600_v4  ;;  %v602_v10 = vld [vmem:[#allocation2 + $0x18] sm:$0xff]  }
  0x34   :  { %621 = vmatpush3.bf16.msra.mxu1 %v669_v1  ;;  %v594_v11 = vunpack.c.l.bf16 %v601_v5  ;;  %v595_v12 = vunpack.c.h.bf16 %v601_v5  ;;  %v598_v13 = vunpack.c.l.bf16 %v602_v10  ;;  %v599_v14 = vunpack.c.h.bf16 %v602_v10 }
  0x35   :  { %622 = vmatprep.subr.bf16.mxu1 %v807_v0  ;;  %v112_v15 = vsel %vm111_vm1, %v586_v6, 0.0  ;;  %v119_v16 = vsel %vm111_vm1, %v587_v7, 0.0  ;;  %v126_v17 = vsel %vm111_vm1, %v590_v8, 0.0  ;;  %v133_v18 = vsel %vm111_vm1, %v591_v9, 0.0 }
  0x36   :  { %v113_v19 = vrot.slane %v112_v15, 4  ;;  %v120_v20 = vrot.slane %v119_v16, 4  ;;  %v127_v21 = vrot.slane %v126_v17, 4  ;;  %v134_v22 = vrot.slane %v133_v18, 4 }
  0x37   :  { %v140_v23 = vsel %vm111_vm1, %v594_v11, 0.0  ;;  %v147_v24 = vsel %vm111_vm1, %v595_v12, 0.0  ;;  %v154_v25 = vsel %vm111_vm1, %v598_v13, 0.0  ;;  %v161_v26 = vsel %vm111_vm1, %v599_v14, 0.0 }
  0x38   :  { %623 = vmatpush3.bf16.msra.mxu1 %v670_v2  ;;  %v114_v27 = vadd.f32 %v113_v19, %v112_v15  ;;  %v121_v28 = vadd.f32 %v120_v20, %v119_v16  ;;  %v128_v29 = vadd.f32 %v127_v21, %v126_v17  ;;  %v135_v30 = vadd.f32 %v134_v22, %v133_v18 }
  0x39   :  { %628 = vmatprep.subr.bf16.mxu1 %v807_v0  ;;  %v141_v31 = vrot.slane %v140_v23, 4  ;;  %v148_v32 = vrot.slane %v147_v24, 4  ;;  %v155_v33 = vrot.slane %v154_v25, 4  ;;  %v162_v34 = vrot.slane %v161_v26, 4 }
  0x3a   :  { %v115_v35 = vrot.slane %v114_v27, 2  ;;  %v122_v36 = vrot.slane %v121_v28, 2  ;;  %v129_v37 = vrot.slane %v128_v29, 2  ;;  %v136_v38 = vrot.slane %v135_v30, 2 }
  0x3b   :  { %v142_v39 = vadd.f32 %v141_v31, %v140_v23  ;;  %v149_v40 = vadd.f32 %v148_v32, %v147_v24  ;;  %v156_v41 = vadd.f32 %v155_v33, %v154_v25  ;;  %v163_v42 = vadd.f32 %v162_v34, %v161_v26  ;;  %v561_v32 = vld [vmem:[%s954_s2] ss:$0 sm:$0xff] }
  0x3c   :  { %v116_v43 = vadd.f32 %v115_v35, %v114_v27  ;;  %v123_v44 = vadd.f32 %v122_v36, %v121_v28  ;;  %v130_v45 = vadd.f32 %v129_v37, %v128_v29  ;;  %v137_v46 = vadd.f32 %v136_v38, %v135_v30 }
  0x3d   :  { %v143_v47 = vrot.slane %v142_v39, 2  ;;  %v150_v48 = vrot.slane %v149_v40, 2  ;;  %v157_v49 = vrot.slane %v156_v41, 2  ;;  %v164_v50 = vrot.slane %v163_v42, 2 }
  0x3e   :  { %v117_v51 = vrot.slane %v116_v43, 1  ;;  %v124_v52 = vrot.slane %v123_v44, 1  ;;  %v131_v53 = vrot.slane %v130_v45, 1  ;;  %v138_v54 = vrot.slane %v137_v46, 1 }
  0x3f   :  { %v144_v55 = vadd.f32 %v143_v47, %v142_v39  ;;  %v151_v56 = vadd.f32 %v150_v48, %v149_v40  ;;  %v158_v57 = vadd.f32 %v157_v49, %v156_v41  ;;  %v165_v58 = vadd.f32 %v164_v50, %v163_v42  ;;  %v673_v47 = vld [vmem:[#allocation7 + $0x8] sm:$0xff]   ;;  %v674_v48 = vld [vmem:[#allocation7] sm:$0xff]  }
  0x40   :  { %v118_v59 = vadd.f32 %v117_v51, %v116_v43  ;;  %v125_v60 = vadd.f32 %v124_v52, %v123_v44  ;;  %v132_v61 = vadd.f32 %v131_v53, %v130_v45  ;;  %v139_v62 = vadd.f32 %v138_v54, %v137_v46  ;;  %v671_v45 = vld [vmem:[#allocation7 + $0x18] sm:$0xff]   ;;  %v672_v46 = vld [vmem:[#allocation7 + $0x10] sm:$0xff]  }
  0x41   :  { %v145_v63 = vrot.slane %v144_v55, 1  ;;  %v152_v1 = vrot.slane %v151_v56, 1  ;;  %v159_v2 = vrot.slane %v158_v57, 1  ;;  %v166_v3 = vrot.slane %v165_v58, 1  ;;  %v565_v53 = vld [vmem:[%s955_s3] ss:$0 sm:$0xff] }
  0x42   :  { %v168_v4 = vpack.c.bf16 %v118_v59, %v118_v59  ;;  %v169_v5 = vpack.c.bf16 %v125_v60, %v125_v60  ;;  %v170_v6 = vpack.c.bf16 %v132_v61, %v132_v61  ;;  %v171_v7 = vpack.c.bf16 %v139_v62, %v139_v62  ;;  %v567_v59 = vld [vmem:[%s958_s6] ss:$0 sm:$0xff] }
  0x43   :  { %v146_v8 = vadd.f32 %v145_v63, %v144_v55  ;;  %v153_v9 = vadd.f32 %v152_v1, %v151_v56  ;;  %v160_v10 = vadd.f32 %v159_v2, %v158_v57  ;;  %v167_v11 = vadd.f32 %v166_v3, %v165_v58  ;;  %v566_v55 = vld [vmem:[%s956_s4] ss:$0 sm:$0xff]  ;;  %v675_v3 = vld [vmem:[#allocation8 + $0x38] sm:$0xff]  }
  0x44   :  { %v195_v12 = vunpack.c.l.b16 %v168_v4  ;;  %v196_v13 = vunpack.c.l.b16 %v169_v5  ;;  %v197_v14 = vunpack.c.l.b16 %v170_v6  ;;  %v198_v15 = vunpack.c.l.b16 %v171_v7  ;;  %641 = vmatpush3.bf16.msra.mxu0 %v675_v3  ;;  %v676_v4 = vld [vmem:[#allocation8 + $0x30] sm:$0xff]  }
  0x45   :  { %v172_v16 = vpack.c.bf16 %v146_v8, %v146_v8  ;;  %v173_v17 = vpack.c.bf16 %v153_v9, %v153_v9  ;;  %v174_v18 = vpack.c.bf16 %v160_v10, %v160_v10  ;;  %v175_v19 = vpack.c.bf16 %v167_v11, %v167_v11  ;;  %642 = vmatprep.subr.bf16.mxu0 %v807_v0  ;;  %v677_v9 = vld [vmem:[#allocation8 + $0x28] sm:$0xff]   ;;  %v678_v10 = vld [vmem:[#allocation8 + $0x20] sm:$0xff]   ;;  %v679_v11 = vld [vmem:[#allocation8 + $0x18] sm:$0xff]  }
  0x46   :  { %v204_v20 = vsel %vm203_vm2, %v196_v13, %v195_v12  ;;  %vm207_vm4 = vcmask 1043459   ;;  %vm209_vm5 = vcmask 1044484   ;;  %vm211_vm6 = vcmask 1045509   ;;  %v680_v12 = vld [vmem:[#allocation8 + $0x10] sm:$0xff]   ;;  %v681_v13 = vld [vmem:[#allocation8 + $0x8] sm:$0xff]  }
  0x47   :  { %v199_v21 = vunpack.c.l.b16 %v172_v16  ;;  %v200_v22 = vunpack.c.l.b16 %v173_v17  ;;  %v201_v23 = vunpack.c.l.b16 %v174_v18  ;;  %v206_v24 = vsel %vm205_vm3, %v197_v14, %v204_v20  ;;  %v682_v14 = vld [vmem:[#allocation8] sm:$0xff]  }
  0x48   :  { %v202_v25 = vunpack.c.l.b16 %v175_v19  ;;  %v208_v26 = vsel %vm207_vm4, %v198_v15, %v206_v24  ;;  %vm213_vm7 = vcmask 1046534   ;;  %vm215_vm8 = vcmask 1047559   ;;  %643 = vmatpush3.bf16.msra.mxu0 %v676_v4  ;;  %v573_v19 = vld [vmem:[%s959_s7] ss:$0 sm:$0xff]  ;;  %s809_s7 = smov [#allocation10]  }
  0x49   :  { %v210_v27 = vsel %vm209_vm5, %v199_v21, %v208_v26  ;;  %vm276_vm9 = vcmask 523264   ;;  %644 = vmatprep.subr.bf16.mxu0 %v807_v0  ;;  %v574_v21 = vld [vmem:[%s960_s8] ss:$0 sm:$0xff]  ;;  %s550_s8 = sshll.u32 %s809_s7, 4  ;;  %s551_s8 = int_to_ptr.vmem [resolvable:$true] %s550_s8 }
  0x4a   :  { %v212_v28 = vsel %vm211_vm6, %v200_v22, %v210_v27  ;;  %p778_p7 = scmp.lt.s32.totalorder %s551_s8, %s551_s8 }
  0x4b   :  { %v214_v29 = vsel %vm213_vm7, %v201_v23, %v212_v28 }
  0x4c   :  { %v216_v30 = vsel %vm215_vm8, %v202_v25, %v214_v29  ;;  %645 = vmatpush3.bf16.msra.mxu0 %v677_v9 }
  0x4d   :  { %v217_v31 = vpack.c.b16 %v216_v30, %v216_v30  ;;  %646 = vmatprep.subr.bf16.mxu0 %v807_v0 }
  0x4f   :  { %625 = vmatmul.mubr.msk.bf16.vlgmr.msra.gmra.mxu1 %vm111_vm1, %v217_v31 }
  0x50   :  { %636 = vmatprep.mubr.msk.bf16.mxu1 %vm808_vm0, %v807_v0  ;;  %629 = vmatpush3.bf16.msra.mxu1 %v671_v45 }
  0x51   :  { %630 = vmatprep.subr.bf16.mxu1 %v807_v0  ;;  %647 = vmatpush3.bf16.msra.mxu0 %v678_v10 }
  0x52   :  { %648 = vmatprep.subr.bf16.mxu0 %v807_v0 }
  0x54   :  { %631 = vmatpush3.bf16.msra.mxu1 %v672_v46 }
  0x55   :  { %632 = vmatprep.subr.bf16.mxu1 %v807_v0  ;;  %649 = vmatpush3.bf16.msra.mxu0 %v679_v11 }
  0x56   :  { %650 = vmatprep.subr.bf16.mxu0 %v807_v0 }
  0x58   :  { %633 = vmatpush3.bf16.msra.mxu1 %v673_v47 }
  0x59   :  { %634 = vmatprep.subr.bf16.mxu1 %v807_v0  ;;  %651 = vmatpush3.bf16.msra.mxu0 %v680_v12 }
  0x5a   :  { %652 = vmatprep.subr.bf16.mxu0 %v807_v0 }
  0x5c   :  { %635 = vmatpush3.bf16.msra.mxu1 %v674_v48 }
  0x5d   :  { %653 = vmatpush3.bf16.msra.mxu0 %v681_v13 }
  0x5e   :  { %654 = vmatprep.subr.bf16.mxu0 %v807_v0  ;;  %v575_v0 = vld [vmem:[%s962_s10] ss:$0 sm:$0xff]  ;;  %s773_s10 = scalar_lea.vmem %s551_s8, 128 }
  0x5f   :  { %p774_p6 = scmp.ne.s32.totalorder %s551_s8, %s773_s10  ;;  %p779_p8 = scmp.lt.s32.totalorder %s773_s10, %s773_s10 }
  0x61   :  { %655 = vmatpush3.bf16.msra.mxu0 %v682_v14  ;;  %p780_p9 = por %p779_p8, %p778_p7 }
  0x63   :  { %p781_p10 = pnand %p780_p9, %p774_p6 }
 0x10f   :  { %v267_v33 = vpop.f32.mrf.mxu1 }
 0x110   :  { %v268_v34 = vadd.f32 %v561_v32, %v267_v33 }
 0x111   :  { %v626_v35 = vpop.f32.mrf.mxu1 }
 0x112   :  { %v273_v36 = vmax.f32 %v268_v34, 0.0 }
 0x113   :  { %v270_v37 = vpop.f32.mrf.mxu1 }
 0x114   :  { %v277_v38 = vsel %vm276_vm9, %v273_v36, 0.0 }
 0x115   :  { %278 = vadd.xlane.f32.xlu0 %v277_v38  ;;  %v627_v39 = vpop.f32.mrf.mxu1 }
 0x19e   :  { %v279_v40 = vpop.xlane.xlu0 %278 }
 0x19f   :  { %v281_v41 = vmul.f32 0.015625, %v279_v40 }
 0x1a1   :  { %v282_v42 = vsub.f32 %v273_v36, %v281_v41 }
 0x1a3   :  { %v283_v43 = vmul.f32 %v282_v42, %v282_v42 }
 0x1a5   :  { %v284_v44 = vsel %vm276_vm9, %v283_v43, 0.0 }
 0x1a6   :  { %285 = vadd.xlane.f32.xlu0 %v284_v44 }
 0x22f   :  { %v286_v49 = vpop.xlane.xlu0 %285 }
 0x230   :  { %v287_v50 = vmul.f32 0.015625, %v286_v49 }
 0x232   :  { %v288_v51 = vadd.f32 1e-05, %v287_v50 }
 0x234   :  { %683 = vrsqrt.f32 %v288_v51 }
 0x241   :  { %v684_v52 = vpop.eup %683 }
 0x242   :  { %v290_v54 = vmul.f32 %v684_v52, %v282_v42 }
 0x244   :  { %v297_v56 = vmul.f32 %v565_v53, %v290_v54 }
 0x246   :  { %v304_v57 = vadd.f32 %v566_v55, %v297_v56 }
 0x248   :  { %v305_v58 = vpack.c.bf16 %v304_v57, %v304_v57 }
 0x24a   :  { %637 = vmatmul.mubr.msk.bf16.vlgmr.msra.gmra.mxu1 %vm276_vm9, %v305_v58 }
 0x30a   :  { %v382_v60 = vpop.f32.mrf.mxu1 }
 0x30b   :  { %v383_v61 = vadd.f32 %v567_v59, %v382_v60 }
 0x30c   :  { %v638_v62 = vpop.f32.mrf.mxu1 }
 0x30d   :  { %v388_v63 = vmax.f32 %v383_v61, 0.0 }
 0x30e   :  { %v385_v1 = vpop.f32.mrf.mxu1 }
 0x30f   :  { %391 = vadd.xlane.f32.xlu1 %v388_v63 }
 0x310   :  { %v639_v2 = vpop.f32.mrf.mxu1 }
 0x398   :  { %v392_v5 = vpop.xlane.xlu1 %391 }
 0x399   :  { %v394_v6 = vmul.f32 0.0078125, %v392_v5 }
 0x39b   :  { %v395_v7 = vsub.f32 %v388_v63, %v394_v6 }
 0x39d   :  { %v396_v8 = vmul.f32 %v395_v7, %v395_v7 }
 0x39f   :  { %397 = vadd.xlane.f32.xlu1 %v396_v8 }
 0x428   :  { %v398_v15 = vpop.xlane.xlu1 %397 }
 0x429   :  { %v399_v16 = vmul.f32 0.0078125, %v398_v15 }
 0x42b   :  { %v400_v17 = vadd.f32 1e-05, %v399_v16 }
 0x42d   :  { %685 = vrsqrt.f32 %v400_v17 }
 0x43a   :  { %v686_v18 = vpop.eup %685 }
 0x43b   :  { %v402_v20 = vmul.f32 %v686_v18, %v395_v7 }
 0x43d   :  { %v409_v22 = vmul.f32 %v573_v19, %v402_v20 }
 0x43f   :  { %v416_v23 = vadd.f32 %v574_v21, %v409_v22 }
 0x441   :  { %v417_v24 = vpack.c.bf16 %v416_v23, %v416_v23 }
 0x443   :  { %657 = vmatmul.mubr.bf16.vlgmr.msra.gmra.mxu0 %v417_v24 }
 0x503   :  { %v523_v25 = vpop.f32.mrf.mxu0 }
 0x504   :  { %v524_v26 = vadd.f32 %v575_v0, %v523_v25 }
 0x505   :  { %v658_v27 = vpop.f32.mrf.mxu0 }
 0x506   :  { %687 = vtanh.f32 %v524_v26 }
 0x507   :  { %v526_v28 = vpop.f32.mrf.mxu0 }
 0x509   :  { %v659_v29 = vpop.f32.mrf.mxu0 }
 0x513   :  { %v688_v30 = vpop.eup %687 }
 0x514   :  { %v530_v31 = vmul.f32 %v688_v30, %v688_v30 }
 0x516   :  { %531 = vadd.xlane.f32.xlu0 %v530_v31 }
 0x59f   :  { %v532_v32 = vpop.xlane.xlu0 %531 }
 0x5a0   :  { %689 = vrsqrt.f32 %v532_v32  ;;  %vm535_vm10 = vcmp.eq.f32.partialorder %v532_v32, inf  ;;  %v538_v35 = vand.u32 2147483648, %v532_v32  ;;  %vm537_vm11 = vcmp.eq.f32.partialorder %v532_v32, 0.0 }
 0x5ad   :  { %v690_v33 = vpop.eup %689 }
 0x5ae   :  { %v534_v34 = vmul.f32 %v690_v33, %v532_v32 }
 0x5b0   :  { %v536_v36 = vsel %vm535_vm10, %v532_v32, %v534_v34 }
 0x5b1   :  { %v539_v37 = vsel %vm537_vm11, %v538_v35, %v536_v36 }
 0x5b2   :  { %v540_v38 = vadd.f32 1e-08, %v539_v37 }
 0x5b4   :  { %691 = vrcp.f32 %v540_v38 }
 0x5c1   :  { %v692_v39 = vpop.eup %691 }
 0x5c2   :  { %v542_v40 = vmul.f32 %v692_v39, %v688_v30 }
 0x5c4   :  { %543 = vst [vmem:[#allocation10] sm:$0xff] %v542_v40 }
 0x5c5   :  { %784 = shalt.err (!%p781_p10)
}
 0x5c6   :  { %553 = dma.vmem_to_hbm [thread:$0]  %s551_s8, 128, %s963_s11, [#allocation4]  }
 0x5c7   :  { %799 = dma.done.wait [#allocation4], 128  }
 0x5c8   :  { %800 = vsyncadd [#allocation4], 4294967168 }
 0x5c9   :  { %557 = vsyncpa [#allocation3], 1 }
 0x5ca   :  { %558 = vsyncpa [#allocation6], 1 }
 0x5cb   :  { %559 = vsyncpa [#allocation9], 1 }
 0x5cc   :  { %560 = vsyncpa [#allocation4], 1 }

</bundles_post_ra>
